<compile_context>
chip_gen: v7x
topology: tpu7x:2x2x1
jax: 0.10.0
libtpu: 0.0.40
codegen_flags: <defaults>
</compile_context>

<pallas_src>
import jax
import jax.numpy as jnp
from jax.experimental import pallas as pl
from jax.experimental.pallas import tpu as pltpu


def _round_up(x, m):
    return ((x + m - 1) // m) * m


def _robert_kernel(y_ref, o_ref):
    """Robertson system RHS on a (3, TB) lane-dense tile."""
    a, b, c = 0.04, 10000.0, 30000000.0
    y0 = y_ref[0:1, :]
    y1 = y_ref[1:2, :]
    y2 = y_ref[2:3, :]
    bterm = b * y1 * y2          # b * y1 * y2
    cterm = c * y1 * y1          # c * y1 ** 2
    o_ref[0:1, :] = -a * y0 + bterm
    o_ref[1:2, :] = a * y0 - bterm - cterm
    o_ref[2:3, :] = cterm


def _sir_kernel(y_ref, o_ref):
    """SIR system RHS on a (3, TB) lane-dense tile."""
    gamma = 0.1
    beta_over_n = 0.1            # beta / N with N = 1.0 folded in
    y0 = y_ref[0:1, :]
    y1 = y_ref[1:2, :]
    infect = beta_over_n * y1 * y0
    recover = gamma * y1
    o_ref[0:1, :] = -infect
    o_ref[1:2, :] = infect - recover
    o_ref[2:3, :] = recover


def ode_forward(t, y, system="Robert", tile_b=2048):
    """Pallas equivalent of ode_torch(system).forward(t, y).

    Args:
      t: unused scalar (kept for signature parity with the PyTorch module).
      y: (batch, 3) float array.
      system: "Robert" or "SIR".
      tile_b: max lane-tile width over the batch axis (multiple of 128).
    Returns:
      (batch, 3) array of time derivatives, same dtype as y.
    """
    del t  # unused, same as the PyTorch module
    if system == "Robert":
        kernel = _robert_kernel
    elif system == "SIR":
        kernel = _sir_kernel
    else:
        raise ValueError(f"unknown system: {system}")

    B, F = y.shape
    if F != 3:
        raise ValueError(f"expected state dimension 3, got {F}")

    orig_dtype = y.dtype

    # (B, 3) -> (3, B): batch on the lane axis; compute in f32 for accuracy.
    yt = y.T.astype(jnp.float32)

    # Lane tile: multiple of 128, no larger than needed for small B.
    TB = min(int(tile_b), max(128, _round_up(B, 128)))
    TB = _round_up(TB, 128)
    B_pad = _round_up(B, TB)
    if B_pad != B:
        yt = jnp.pad(yt, ((0, 0), (0, B_pad - B)))

    grid = (B_pad // TB,)

    out_t = pl.pallas_call(
        kernel,
        out_shape=jax.ShapeDtypeStruct((3, B_pad), jnp.float32),
        grid=grid,
        in_specs=[pl.BlockSpec((3, TB), lambda i: (0, i))],
        out_specs=pl.BlockSpec((3, TB), lambda i: (0, i)),
        compiler_params=pltpu.CompilerParams(
            dimension_semantics=("parallel",)),
    )(yt)

    return out_t[:, :B].T.astype(orig_dtype)


# ------------------------- pure-JAX references -------------------------

def _robert_ref(y):
    a, b, c = 0.04, 10000.0, 30000000.0
    y0, y1, y2 = y[:, 0:1], y[:, 1:2], y[:, 2:3]
    return jnp.concatenate(
        (-a * y0 + b * y1 * y2,
         a * y0 - b * y1 * y2 - c * y1 ** 2,
         c * y1 ** 2),
        axis=1,
    )


def _sir_ref(y):
    gamma, beta, N = 0.1, 0.1, 1.0
    y0, y1 = y[:, 0:1], y[:, 1:2]
    return jnp.concatenate(
        (-beta * y1 * y0 / N,
         beta * y0 * y1 / N - gamma * y1,
         gamma * y1),
        axis=1,
    )


if __name__ == "__main__":
    key = jax.random.PRNGKey(0)
    t = jnp.float32(0.0)

    ok = True
    # Small batch (single tile) and a batch that exercises padding + grid.
    for batch in (8, 300):
        y = jax.random.uniform(
            jax.random.fold_in(key, batch),
            (batch, 3), dtype=jnp.float32, minval=0.0, maxval=1.0)
        for system, ref_fn in (("Robert", _robert_ref), ("SIR", _sir_ref)):
            out = jax.block_until_ready(ode_forward(t, y, system=system))
            ref = ref_fn(y)
            if out.shape != ref.shape or not jnp.allclose(
                    out, ref, rtol=1e-5, atol=1e-5):
                ok = False
                print(f"MISMATCH in system {system} (batch={batch})")

    if ok:
        print("KERNEL_OK")
</pallas_src>

<mosaic_0001>
module attributes {stable_mosaic.version = 11 : i64} {
  func.func @_robert_kernel(%arg0: i32, %arg1: memref<3x128xf32, #tpu.memory_space<vmem>>, %arg2: memref<3x128xf32, #tpu.memory_space<vmem>>) attributes {dimension_semantics = [#tpu.dimension_semantics<parallel>], iteration_bounds = array<i64: 1>, scalar_prefetch = 0 : i64, scratch_operands = 0 : i64, tpu.core_type = #tpu.core_type<tc>, window_params = [{transform_indices = @transform_0, window_bounds = array<i64: 3, 128>}, {transform_indices = @transform_1, window_bounds = array<i64: 3, 128>}]} {
    %c0 = arith.constant 0 : index
    %c0_0 = arith.constant 0 : index
    %0 = vector.load %arg1[%c0, %c0_0] : memref<3x128xf32, #tpu.memory_space<vmem>>, vector<1x128xf32>
    %c1 = arith.constant 1 : index
    %c0_1 = arith.constant 0 : index
    %1 = vector.load %arg1[%c1, %c0_1] : memref<3x128xf32, #tpu.memory_space<vmem>>, vector<1x128xf32>
    %c2 = arith.constant 2 : index
    %c0_2 = arith.constant 0 : index
    %2 = vector.load %arg1[%c2, %c0_2] : memref<3x128xf32, #tpu.memory_space<vmem>>, vector<1x128xf32>
    %cst = arith.constant 1.000000e+04 : f32
    %3 = vector.broadcast %cst : f32 to vector<1x128xf32>
    %4 = arith.mulf %3, %1 : vector<1x128xf32>
    %5 = arith.mulf %4, %2 : vector<1x128xf32>
    %cst_3 = arith.constant 3.000000e+07 : f32
    %6 = vector.broadcast %cst_3 : f32 to vector<1x128xf32>
    %7 = arith.mulf %6, %1 : vector<1x128xf32>
    %8 = arith.mulf %7, %1 : vector<1x128xf32>
    %cst_4 = arith.constant -4.000000e-02 : f32
    %9 = vector.broadcast %cst_4 : f32 to vector<1x128xf32>
    %10 = arith.mulf %9, %0 : vector<1x128xf32>
    %11 = arith.addf %10, %5 : vector<1x128xf32>
    %c0_5 = arith.constant 0 : index
    %c0_6 = arith.constant 0 : index
    %12 = vector.load %arg2[%c0_5, %c0_6] : memref<3x128xf32, #tpu.memory_space<vmem>>, vector<1x128xf32>
    tpu.vector_store %arg2[%c0_5, %c0_6], %11 {strides = array<i32>} : memref<3x128xf32, #tpu.memory_space<vmem>>, vector<1x128xf32>,
    %cst_7 = arith.constant 4.000000e-02 : f32
    %13 = vector.broadcast %cst_7 : f32 to vector<1x128xf32>
    %14 = arith.mulf %13, %0 : vector<1x128xf32>
    %15 = arith.subf %14, %5 : vector<1x128xf32>
    %16 = arith.subf %15, %8 : vector<1x128xf32>
    %c1_8 = arith.constant 1 : index
    %c0_9 = arith.constant 0 : index
    %17 = vector.load %arg2[%c1_8, %c0_9] : memref<3x128xf32, #tpu.memory_space<vmem>>, vector<1x128xf32>
    tpu.vector_store %arg2[%c1_8, %c0_9], %16 {strides = array<i32>} : memref<3x128xf32, #tpu.memory_space<vmem>>, vector<1x128xf32>,
    %c2_10 = arith.constant 2 : index
    %c0_11 = arith.constant 0 : index
    %18 = vector.load %arg2[%c2_10, %c0_11] : memref<3x128xf32, #tpu.memory_space<vmem>>, vector<1x128xf32>
    tpu.vector_store %arg2[%c2_10, %c0_11], %8 {strides = array<i32>} : memref<3x128xf32, #tpu.memory_space<vmem>>, vector<1x128xf32>,
    return
  }
  func.func @transform_0(%arg0: i32) -> (i32, i32) {
    %c0_i32 = arith.constant 0 : i32
    %c0_i32_0 = arith.constant 0 : i32
    return %c0_i32, %arg0 : i32, i32
  }
  func.func @transform_1(%arg0: i32) -> (i32, i32) {
    %c0_i32 = arith.constant 0 : i32
    %c0_i32_0 = arith.constant 0 : i32
    return %c0_i32, %arg0 : i32, i32
  }
}

</mosaic_0001>

<bundles_post_ra>
// kernel: tpu_custom_call.1
= control target key start
LH: loop header
LB: loop body
LE: loop exit
PB: predicated region body
PF: predicated region fallthrough
CT: control target
= control target key end

     0   :  { %6 = vsyncpa [#allocation3], 0  ;;  %s137_s0 = inlined_call_operand.hbm [shape: f32[3,128], index: 0, kind: input, shape index: {}]   ;;  %s138_s1 = inlined_call_operand.hbm [shape: f32[3,128], index: 1, kind: output, shape index: {}]  }
   0x1   :  { %7 = vsyncpa [#allocation4], 0  ;;  %s101_s6 = smov [#allocation2]   ;;  %s53_s10 = scalar_lea.hbm %s137_s0, 64 }
   0x2   :  { %s14_s7 = sshll.u32 %s101_s6, 4  ;;  %p54_p0 = scmp.ne.s32.totalorder %s137_s0, %s53_s10  ;;  %s15_s7 = int_to_ptr.vmem [resolvable:$true] %s14_s7 }
   0x3   :  { %p57_p1 = scmp.lt.u32.totalorder %s53_s10, %s137_s0 }
   0x5   :  { %p59_p2 = pnand %p57_p1, %p54_p0 }
   0x7   :  { %62 = shalt.err (!%p59_p2)
}
   0x8   :  { %s63_s15 = scalar_lea.vmem %s15_s7, 64  ;;  %p68_p4 = scmp.lt.s32.totalorder %s15_s7, %s15_s7 }
   0x9   :  { %p64_p3 = scmp.ne.s32.totalorder %s15_s7, %s63_s15  ;;  %p69_p5 = scmp.lt.s32.totalorder %s63_s15, %s63_s15 }
   0xb   :  { %p70_p6 = por %p69_p5, %p68_p4 }
   0xd   :  { %p71_p7 = pnand %p70_p6, %p64_p3 }
   0xf   :  { %74 = shalt.err (!%p71_p7)
}
  0x10   :  { %17 = dma.hbm_to_vmem [thread:$0]  %s137_s0, 64, %s15_s7, [#allocation3]  }
  0x11   :  { %97 = dma.done.wait [#allocation3], 64  }
  0x12   :  { %98 = vsyncadd [#allocation3], 4294967232  ;;  %v21_v0 = vld [vmem:[#allocation2] sm:$0x1]  ;;  %v22_v1 = vld [vmem:[#allocation2 + $0x1] sm:$0x1] }
  0x13   :  { %v23_v2 = vld [vmem:[#allocation2 + $0x2] sm:$0x1]  ;;  %v24_v3 = vmul.f32 10000.0, %v22_v1  ;;  %v28_v4 = vmul.f32 -0.04, %v21_v0  ;;  %s102_s18 = smov [#allocation5]  }
  0x14   :  { %v26_v5 = vmul.f32 30000000.0, %v22_v1  ;;  %v31_v6 = vmul.f32 0.04, %v21_v0  ;;  %s42_s19 = sshll.u32 %s102_s18, 4  ;;  %s43_s19 = int_to_ptr.vmem [resolvable:$true] %s42_s19 }
  0x15   :  { %v25_v7 = vmul.f32 %v24_v3, %v23_v2  ;;  %s75_s0 = scalar_lea.vmem %s43_s19, 64  ;;  %p80_p9 = scmp.lt.s32.totalorder %s43_s19, %s43_s19 }
  0x16   :  { %v27_v8 = vmul.f32 %v26_v5, %v22_v1  ;;  %p76_p8 = scmp.ne.s32.totalorder %s43_s19, %s75_s0  ;;  %p81_p10 = scmp.lt.s32.totalorder %s75_s0, %s75_s0 }
  0x17   :  { %v29_v9 = vadd.f32 %v28_v4, %v25_v7  ;;  %v32_v10 = vsub.f32 %v31_v6, %v25_v7 }
  0x18   :  { %35 = vst [vmem:[#allocation5 + $0x2] sm:$0x1] %v27_v8  ;;  %p82_p11 = por %p81_p10, %p80_p9 }
  0x19   :  { %30 = vst [vmem:[#allocation5] sm:$0x1] %v29_v9  ;;  %v33_v11 = vsub.f32 %v32_v10, %v27_v8 }
  0x1a   :  { %p83_p12 = pnand %p82_p11, %p76_p8 }
  0x1b   :  { %34 = vst [vmem:[#allocation5 + $0x1] sm:$0x1] %v33_v11 }
  0x1c   :  { %86 = shalt.err (!%p83_p12)
}
  0x1d   :  { %s87_s22 = scalar_lea.hbm %s138_s1, 64 }
  0x1e   :  { %p88_p13 = scmp.ne.s32.totalorder %s138_s1, %s87_s22  ;;  %p91_p0 = scmp.lt.u32.totalorder %s87_s22, %s138_s1 }
  0x20   :  { %p93_p1 = pnand %p91_p0, %p88_p13 }
  0x22   :  { %96 = shalt.err (!%p93_p1)
}
  0x23   :  { %45 = dma.vmem_to_hbm [thread:$0]  %s43_s19, 64, %s138_s1, [#allocation4]  }
  0x24   :  { %99 = dma.done.wait [#allocation4], 64  }
  0x25   :  { %100 = vsyncadd [#allocation4], 4294967232 }
  0x26   :  { %49 = vsyncpa [#allocation3], 1 }
  0x27   :  { %50 = vsyncpa [#allocation4], 1 }

</bundles_post_ra>
